<compile_context>
chip_gen: v7x
topology: tpu7x:2x2x1
jax: 0.10.0
libtpu: 0.0.40
codegen_flags: <defaults>
</compile_context>

<pallas_src>
import functools

import jax
import jax.numpy as jnp
from jax import lax
from jax.experimental import pallas as pl
from jax.experimental.pallas import tpu as pltpu

C_PAD = 128          # lane-dense channel padding (output last dim)
TILE_M = 256         # rows (N*H_out*W_out) per grid step
EPS = 1e-5
NEG_SLOPE = 0.2


def _round_up(x, m):
    return (x + m - 1) // m * m


def _conv_stats_kernel(patches_ref, w_ref, sum_ref, sumsq_ref):
    """Conv matmul + per-tile partial per-channel sum / sum-of-squares."""
    y = jnp.dot(patches_ref[...], w_ref[...],
                preferred_element_type=jnp.float32)          # (tm, C_PAD) f32
    sum_ref[0] = jnp.sum(y, axis=0, keepdims=True)           # (1, C_PAD)
    sumsq_ref[0] = jnp.sum(y * y, axis=0, keepdims=True)     # (1, C_PAD)


def _conv_bn_lrelu_kernel(patches_ref, w_ref, scale_ref, shift_ref, out_ref):
    """Conv matmul + folded batch-norm affine + LeakyReLU(0.2), all f32."""
    y = jnp.dot(patches_ref[...], w_ref[...],
                preferred_element_type=jnp.float32)          # (tm, C_PAD) f32
    # Folded BN: one broadcasted multiply-add (scale/shift are (1, C_PAD) rows).
    z = y * scale_ref[...] + shift_ref[...]
    out_ref[...] = jnp.where(z >= 0, z, NEG_SLOPE * z)


def _im2col(x, kh, kw, pad):
    # x: (N, C, H, W) -> patches (N*H_out*W_out, C*kh*kw); rows n-major/h/w,
    # columns channel-major then (kh, kw) — matches conv_w.reshape(C_out, -1).
    n, c, h, w = x.shape
    xp = jnp.pad(x, ((0, 0), (0, 0), (pad, pad), (pad, pad)))
    h_out = h + 2 * pad - kh + 1
    w_out = w + 2 * pad - kw + 1
    cols = []
    for dy in range(kh):
        for dx in range(kw):
            cols.append(xp[:, :, dy:dy + h_out, dx:dx + w_out])  # (N, C, Ho, Wo)
    patches = jnp.stack(cols, axis=0)                            # (kh*kw, N, C, Ho, Wo)
    patches = jnp.transpose(patches, (1, 3, 4, 2, 0))            # (N, Ho, Wo, C, kh*kw)
    patches = patches.reshape(n * h_out * w_out, c * kh * kw)
    return patches, h_out, w_out


@functools.partial(jax.jit, static_argnames=("padding",))
def cnnblock_forward(x, conv_w, conv_b, bn_gamma, bn_beta, *, padding=1):
    """x: (N, C_in, H, W) NCHW. conv_w: (C_out, C_in, KH, KW). Returns NCHW."""
    del conv_b  # Train-mode BN mean-subtraction cancels the conv bias exactly.
    n, c_in, h, w = x.shape
    c_out, _, kh, kw = conv_w.shape
    assert c_out <= C_PAD

    patches, h_out, w_out = _im2col(x.astype(jnp.float32), kh, kw, padding)
    m, k = patches.shape

    tm = min(TILE_M, _round_up(m, 8))
    m_pad = _round_up(m, tm)
    n_tiles = m_pad // tm
    if m_pad != m:
        patches = jnp.pad(patches, ((0, m_pad - m), (0, 0)))  # zero rows: no
        # effect on sums/sumsq; sliced away after pass 2.

    # (C_out, K) -> (K, C_PAD): zero-pad channels so every store is lane-dense.
    w_mat = jnp.pad(conv_w.reshape(c_out, c_in * kh * kw).T.astype(jnp.float32),
                    ((0, 0), (0, C_PAD - c_out)))

    cparams = pltpu.CompilerParams(
        dimension_semantics=("parallel",),     # M axis megacore-shardable
        vmem_limit_bytes=32 * 1024 * 1024,     # explicit; fits v7x's 64 MiB VMEM
    )
    matmul_flops = 2 * m_pad * k * C_PAD
    patches_bytes = m_pad * k * 4
    w_bytes = k * C_PAD * 4

    # ---- Pass 1: conv + per-tile partial BN statistics (parallel over M). ----
    sums, sumsqs = pl.pallas_call(
        _conv_stats_kernel,
        out_shape=(jax.ShapeDtypeStruct((n_tiles, 1, C_PAD), jnp.float32),
                   jax.ShapeDtypeStruct((n_tiles, 1, C_PAD), jnp.float32)),
        grid_spec=pltpu.PrefetchScalarGridSpec(
            num_scalar_prefetch=0,
            grid=(n_tiles,),
            in_specs=[pl.BlockSpec((tm, k), lambda i: (i, 0)),
                      pl.BlockSpec((k, C_PAD), lambda i: (0, 0))],
            out_specs=(pl.BlockSpec((1, 1, C_PAD), lambda i: (i, 0, 0)),
                       pl.BlockSpec((1, 1, C_PAD), lambda i: (i, 0, 0))),
        ),
        compiler_params=cparams,
        cost_estimate=pl.CostEstimate(
            flops=matmul_flops, transcendentals=0,
            bytes_accessed=patches_bytes + w_bytes + 2 * n_tiles * C_PAD * 4),
    )(patches, w_mat)

    # ---- Tiny per-channel reduction + BN folding (f32 accumulators). ----
    mean = jnp.sum(sums[:, 0, :], axis=0) / m                  # (C_PAD,)
    ex2 = jnp.sum(sumsqs[:, 0, :], axis=0) / m
    var = jnp.maximum(ex2 - mean * mean, 0.0)                  # biased variance
    inv_std = lax.rsqrt(var + EPS)
    gamma_pad = jnp.pad(bn_gamma.astype(jnp.float32), (0, C_PAD - c_out))
    beta_pad = jnp.pad(bn_beta.astype(jnp.float32), (0, C_PAD - c_out))
    scale = (gamma_pad * inv_std).reshape(1, C_PAD)
    shift = (beta_pad - mean * gamma_pad * inv_std).reshape(1, C_PAD)

    # ---- Pass 2: conv recompute + folded BN + LeakyReLU (parallel over M). ----
    out_full = pl.pallas_call(
        _conv_bn_lrelu_kernel,
        out_shape=jax.ShapeDtypeStruct((m_pad, C_PAD), jnp.float32),
        grid_spec=pltpu.PrefetchScalarGridSpec(
            num_scalar_prefetch=0,
            grid=(n_tiles,),
            in_specs=[pl.BlockSpec((tm, k), lambda i: (i, 0)),
                      pl.BlockSpec((k, C_PAD), lambda i: (0, 0)),
                      pl.BlockSpec((1, C_PAD), lambda i: (0, 0)),
                      pl.BlockSpec((1, C_PAD), lambda i: (0, 0))],
            out_specs=pl.BlockSpec((tm, C_PAD), lambda i: (i, 0)),
        ),
        compiler_params=cparams,
        cost_estimate=pl.CostEstimate(
            flops=matmul_flops + 4 * m_pad * C_PAD, transcendentals=0,
            bytes_accessed=patches_bytes + w_bytes + m_pad * C_PAD * 4),
    )(patches, w_mat, scale, shift)

    # Transpose on the lane-dense padded-channel tensor, then slice channels.
    out = out_full[:m].reshape(n, h_out, w_out, C_PAD)
    out = jnp.transpose(out, (0, 3, 1, 2))[:, :c_out]          # NCHW
    return out


def _reference_forward(x, conv_w, conv_b, bn_gamma, bn_beta, *, padding=1):
    # Pure-JAX f32 reference for correctness checking (matches PyTorch module).
    y = lax.conv_general_dilated(
        x, conv_w, window_strides=(1, 1),
        padding=[(padding, padding), (padding, padding)],
        dimension_numbers=("NCHW", "OIHW", "NCHW"),
    ) + conv_b[None, :, None, None]
    mean = jnp.mean(y, axis=(0, 2, 3), keepdims=True)
    var = jnp.mean((y - mean) ** 2, axis=(0, 2, 3), keepdims=True)
    y = (y - mean) * lax.rsqrt(var + EPS)
    y = bn_gamma[None, :, None, None] * y + bn_beta[None, :, None, None]
    return jnp.where(y >= 0, y, NEG_SLOPE * y)


if __name__ == "__main__":
    key = jax.random.PRNGKey(0)
    k_x, k_w, k_b, k_g, k_beta = jax.random.split(key, 5)

    # CNNblock(in_channels=4, out_channels=8, kernel_size=3, padding=1)
    N, C_in, H, W = 2, 4, 16, 16
    C_out, KH, KW = 8, 3, 3

    x = jax.random.normal(k_x, (N, C_in, H, W), dtype=jnp.float32)
    conv_w = jax.random.normal(k_w, (C_out, C_in, KH, KW), dtype=jnp.float32) * 0.1
    conv_b = jax.random.normal(k_b, (C_out,), dtype=jnp.float32) * 0.1
    bn_gamma = 1.0 + 0.1 * jax.random.normal(k_g, (C_out,), dtype=jnp.float32)
    bn_beta = 0.1 * jax.random.normal(k_beta, (C_out,), dtype=jnp.float32)

    out = cnnblock_forward(x, conv_w, conv_b, bn_gamma, bn_beta, padding=1)
    out = jax.block_until_ready(out)

    ref = _reference_forward(x, conv_w, conv_b, bn_gamma, bn_beta, padding=1)
    assert out.shape == (N, C_out, H, W), out.shape
    assert jnp.allclose(out, ref, atol=2e-4, rtol=2e-4), (
        "mismatch vs reference, max abs err = "
        + str(float(jnp.max(jnp.abs(out - ref)))))

    print("KERNEL_OK")
</pallas_src>

<mosaic_0001>
module attributes {stable_mosaic.version = 11 : i64} {
  func.func @_conv_stats_kernel(%arg0: i32, %arg1: memref<256x36xf32, #tpu.memory_space<vmem>>, %arg2: memref<36x128xf32, #tpu.memory_space<vmem>>, %arg3: memref<1x1x128xf32, #tpu.memory_space<vmem>>, %arg4: memref<1x1x128xf32, #tpu.memory_space<vmem>>) attributes {dimension_semantics = [#tpu.dimension_semantics<parallel>], iteration_bounds = array<i64: 2>, scalar_prefetch = 0 : i64, scratch_operands = 0 : i64, tpu.core_type = #tpu.core_type<tc>, window_params = [{transform_indices = @transform_0, window_bounds = array<i64: 256, 36>}, {pipeline_mode = #tpu.pipeline_mode<synchronous>, transform_indices = @transform_1, window_bounds = array<i64: 36, 128>}, {transform_indices = @transform_2, window_bounds = array<i64: 1, 1, 128>}, {transform_indices = @transform_3, window_bounds = array<i64: 1, 1, 128>}]} {
    %c0 = arith.constant 0 : index
    %c0_0 = arith.constant 0 : index
    %0 = vector.load %arg1[%c0, %c0_0] : memref<256x36xf32, #tpu.memory_space<vmem>>, vector<256x36xf32>
    %c0_1 = arith.constant 0 : index
    %c0_2 = arith.constant 0 : index
    %1 = vector.load %arg2[%c0_1, %c0_2] : memref<36x128xf32, #tpu.memory_space<vmem>>, vector<36x128xf32>
    %cst = arith.constant dense<0.000000e+00> : vector<256x128xf32>
    %2 = tpu.matmul %0, %1, %cst {dimension_numbers = #tpu.dot_dimension_numbers<[1], [0], [0], [1], [0, 0, 1, 1], [], []>} : vector<256x36xf32>, vector<36x128xf32>, vector<256x128xf32> -> vector<256x128xf32>
    %cst_3 = arith.constant dense<0.000000e+00> : vector<128xf32>
    %3 = vector.multi_reduction <add>, %2, %cst_3 [0] : vector<256x128xf32> to vector<128xf32>
    %4 = vector.shape_cast %3 : vector<128xf32> to vector<1x128xf32>
    %c0_4 = arith.constant 0 : index
    %c0_5 = arith.constant 0 : index
    %c0_6 = arith.constant 0 : index
    %5 = vector.load %arg3[%c0_4, %c0_5, %c0_6] : memref<1x1x128xf32, #tpu.memory_space<vmem>>, vector<1x1x128xf32>
    %6 = vector.shape_cast %5 : vector<1x1x128xf32> to vector<1x128xf32>
    %7 = vector.shape_cast %4 : vector<1x128xf32> to vector<1x1x128xf32>
    tpu.vector_store %arg3[%c0_4, %c0_5, %c0_6], %7 {strides = array<i32>} : memref<1x1x128xf32, #tpu.memory_space<vmem>>, vector<1x1x128xf32>,
    %8 = arith.mulf %2, %2 : vector<256x128xf32>
    %cst_7 = arith.constant dense<0.000000e+00> : vector<128xf32>
    %9 = vector.multi_reduction <add>, %8, %cst_7 [0] : vector<256x128xf32> to vector<128xf32>
    %10 = vector.shape_cast %9 : vector<128xf32> to vector<1x128xf32>
    %c0_8 = arith.constant 0 : index
    %c0_9 = arith.constant 0 : index
    %c0_10 = arith.constant 0 : index
    %11 = vector.load %arg4[%c0_8, %c0_9, %c0_10] : memref<1x1x128xf32, #tpu.memory_space<vmem>>, vector<1x1x128xf32>
    %12 = vector.shape_cast %11 : vector<1x1x128xf32> to vector<1x128xf32>
    %13 = vector.shape_cast %10 : vector<1x128xf32> to vector<1x1x128xf32>
    tpu.vector_store %arg4[%c0_8, %c0_9, %c0_10], %13 {strides = array<i32>} : memref<1x1x128xf32, #tpu.memory_space<vmem>>, vector<1x1x128xf32>,
    return
  }
  func.func @transform_0(%arg0: i32) -> (i32, i32) {
    %c0_i32 = arith.constant 0 : i32
    %c0_i32_0 = arith.constant 0 : i32
    return %arg0, %c0_i32 : i32, i32
  }
  func.func @transform_1(%arg0: i32) -> (i32, i32) {
    %c0_i32 = arith.constant 0 : i32
    %c0_i32_0 = arith.constant 0 : i32
    %c0_i32_1 = arith.constant 0 : i32
    return %c0_i32, %c0_i32_0 : i32, i32
  }
  func.func @transform_2(%arg0: i32) -> (i32, i32, i32) {
    %c0_i32 = arith.constant 0 : i32
    %c0_i32_0 = arith.constant 0 : i32
    %c0_i32_1 = arith.constant 0 : i32
    return %arg0, %c0_i32, %c0_i32_0 : i32, i32, i32
  }
  func.func @transform_3(%arg0: i32) -> (i32, i32, i32) {
    %c0_i32 = arith.constant 0 : i32
    %c0_i32_0 = arith.constant 0 : i32
    %c0_i32_1 = arith.constant 0 : i32
    return %arg0, %c0_i32, %c0_i32_0 : i32, i32, i32
  }
}

module attributes {stable_mosaic.version = 11 : i64} {
  func.func @_conv_bn_lrelu_kernel(%arg0: i32, %arg1: memref<256x36xf32, #tpu.memory_space<vmem>>, %arg2: memref<36x128xf32, #tpu.memory_space<vmem>>, %arg3: memref<1x128xf32, #tpu.memory_space<vmem>>, %arg4: memref<1x128xf32, #tpu.memory_space<vmem>>, %arg5: memref<256x128xf32, #tpu.memory_space<vmem>>) attributes {dimension_semantics = [#tpu.dimension_semantics<parallel>], iteration_bounds = array<i64: 2>, scalar_prefetch = 0 : i64, scratch_operands = 0 : i64, tpu.core_type = #tpu.core_type<tc>, window_params = [{transform_indices = @transform_0, window_bounds = array<i64: 256, 36>}, {pipeline_mode = #tpu.pipeline_mode<synchronous>, transform_indices = @transform_1, window_bounds = array<i64: 36, 128>}, {pipeline_mode = #tpu.pipeline_mode<synchronous>, transform_indices = @transform_2, window_bounds = array<i64: 1, 128>}, {pipeline_mode = #tpu.pipeline_mode<synchronous>, transform_indices = @transform_3, window_bounds = array<i64: 1, 128>}, {transform_indices = @transform_4, window_bounds = array<i64: 256, 128>}]} {
    %c0 = arith.constant 0 : index
    %c0_0 = arith.constant 0 : index
    %0 = vector.load %arg1[%c0, %c0_0] : memref<256x36xf32, #tpu.memory_space<vmem>>, vector<256x36xf32>
    %c0_1 = arith.constant 0 : index
    %c0_2 = arith.constant 0 : index
    %1 = vector.load %arg2[%c0_1, %c0_2] : memref<36x128xf32, #tpu.memory_space<vmem>>, vector<36x128xf32>
    %cst = arith.constant dense<0.000000e+00> : vector<256x128xf32>
    %2 = tpu.matmul %0, %1, %cst {dimension_numbers = #tpu.dot_dimension_numbers<[1], [0], [0], [1], [0, 0, 1, 1], [], []>} : vector<256x36xf32>, vector<36x128xf32>, vector<256x128xf32> -> vector<256x128xf32>
    %c0_3 = arith.constant 0 : index
    %c0_4 = arith.constant 0 : index
    %3 = vector.load %arg3[%c0_3, %c0_4] : memref<1x128xf32, #tpu.memory_space<vmem>>, vector<1x128xf32>
    %4 = vector.broadcast %3 : vector<1x128xf32> to vector<256x128xf32>
    %5 = arith.mulf %2, %4 : vector<256x128xf32>
    %c0_5 = arith.constant 0 : index
    %c0_6 = arith.constant 0 : index
    %6 = vector.load %arg4[%c0_5, %c0_6] : memref<1x128xf32, #tpu.memory_space<vmem>>, vector<1x128xf32>
    %7 = vector.broadcast %6 : vector<1x128xf32> to vector<256x128xf32>
    %8 = arith.addf %5, %7 : vector<256x128xf32>
    %cst_7 = arith.constant 0.000000e+00 : f32
    %9 = vector.broadcast %cst_7 : f32 to vector<256x128xf32>
    %10 = arith.cmpf oge, %8, %9 : vector<256x128xf32>
    %cst_8 = arith.constant 2.000000e-01 : f32
    %11 = vector.broadcast %cst_8 : f32 to vector<256x128xf32>
    %12 = arith.mulf %11, %8 : vector<256x128xf32>
    %13 = arith.select %10, %8, %12 : vector<256x128xi1>, vector<256x128xf32>
    %c0_9 = arith.constant 0 : index
    %c0_10 = arith.constant 0 : index
    %14 = vector.load %arg5[%c0_9, %c0_10] : memref<256x128xf32, #tpu.memory_space<vmem>>, vector<256x128xf32>
    tpu.vector_store %arg5[%c0_9, %c0_10], %13 {strides = array<i32>} : memref<256x128xf32, #tpu.memory_space<vmem>>, vector<256x128xf32>,
    return
  }
  func.func @transform_0(%arg0: i32) -> (i32, i32) {
    %c0_i32 = arith.constant 0 : i32
    %c0_i32_0 = arith.constant 0 : i32
    return %arg0, %c0_i32 : i32, i32
  }
  func.func @transform_1(%arg0: i32) -> (i32, i32) {
    %c0_i32 = arith.constant 0 : i32
    %c0_i32_0 = arith.constant 0 : i32
    %c0_i32_1 = arith.constant 0 : i32
    return %c0_i32, %c0_i32_0 : i32, i32
  }
  func.func @transform_2(%arg0: i32) -> (i32, i32) {
    %c0_i32 = arith.constant 0 : i32
    %c0_i32_0 = arith.constant 0 : i32
    %c0_i32_1 = arith.constant 0 : i32
    return %c0_i32, %c0_i32_0 : i32, i32
  }
  func.func @transform_3(%arg0: i32) -> (i32, i32) {
    %c0_i32 = arith.constant 0 : i32
    %c0_i32_0 = arith.constant 0 : i32
    %c0_i32_1 = arith.constant 0 : i32
    return %c0_i32, %c0_i32_0 : i32, i32
  }
  func.func @transform_4(%arg0: i32) -> (i32, i32) {
    %c0_i32 = arith.constant 0 : i32
    %c0_i32_0 = arith.constant 0 : i32
    return %arg0, %c0_i32 : i32, i32
  }
}

</mosaic_0001>

<bundles_post_ra>
// kernel: cnnblock_forward.2
= control target key start
LH: loop header
LB: loop body
LE: loop exit
PB: predicated region body
PF: predicated region fallthrough
CT: control target
= control target key end

     0   :  { %s908_s12 = smov 0   ;;  %s1059_s0 = inlined_call_operand.vmem [shape: f32[512,36], index: 0, kind: input, shape index: {}]   ;;  %s1060_s1 = inlined_call_operand.vmem [shape: f32[36,128], index: 1, kind: input, shape index: {}]   ;;  %s1061_s2 = inlined_call_operand.vmem [shape: f32[2,1,128], index: 2, kind: output, shape index: {0}]   ;;  %s1062_s3 = inlined_call_operand.vmem [shape: f32[2,1,128], index: 3, kind: output, shape index: {1}]  }
   0x1 LB: > { %s914_s13 = sadd.s32 4294967295, %s886_s12   ;;  %p725_p0 = scmp.ge.s32.totalorder %s886_s12, 1  ;;  %s886_s12 = sphi %s908_s12, %s14_s12  }
   0x2   : > { %p141_p1 = scmp.lt.s32.totalorder %s886_s12, 3 }
   0x4   : > { %p142_p2 = pnand %p725_p0, %p141_p1 }
   0x5   : > { %v210_v0 = vld [vmem:[%s1060_s1] sm:$0xff] (!%p142_p2)  ;;  %v211_v1 = vld [vmem:[%s1060_s1 + $0x8] sm:$0xff] (!%p142_p2)  ;;  %v212_v2 = vld [vmem:[%s1060_s1 + $0x10] sm:$0xff] (!%p142_p2)  ;;  %s726_s20 = sshll.u32 (!%p142_p2), %s914_s13, 5  ;;  %vm215_vm0 = vcmask (!%p142_p2), 293888   ;;  %vm312_vm1 = vcmask (!%p142_p2), 1043456  }
   0x6   : > { %145 = sbr.rel (%p142_p2) target bundleno = 310 (0x136), region = 28  ;;  %v858_v3 = vpack.c.bf16 (!%p142_p2), %v211_v1, %v210_v0  ;;  %v213_v4 = vld [vmem:[%s1060_s1 + $0x18] sm:$0xff] (!%p142_p2)  ;;  %p167_p3 = scmp.lt.s32.totalorder (!%p142_p2), %s726_s20, 63  ;;  %v214_v6 = vld [vmem:[%s1060_s1 + $0x20] sm:$0xf] (!%p142_p2) }
   0x7   : > { %v862_v5 = vpack.c.bf16 (!%p142_p2), %v213_v4, %v212_v2  ;;  %p172_p4 = scmp.lt.s32.totalorder (!%p142_p2), %s914_s13, 1 }
   0x8   : > { %859 = vmatprep.subr.bf16.mxu0 (!%p142_p2), %v858_v3  ;;  %866 = vmatprep.subr.bf16.mxu1 (!%p142_p2), %v858_v3 }
   0x9   : > { %861 = vmatpush3.bf16.msra.mxu0 (!%p142_p2), %v858_v3  ;;  %869 = vmatpush3.bf16.msra.mxu1 (!%p142_p2), %v858_v3 }
   0xa   : > { %863 = vmatprep.subr.bf16.mxu0 (!%p142_p2), %v862_v5  ;;  %867 = vmatprep.subr.bf16.mxu1 (!%p142_p2), %v862_v5 }
   0xd   : > { %s1064_s20 = smov (!%p167_p3, %s726_s20), 63  ;;  %865 = vmatpush3.bf16.msra.mxu0 %v862_v5  ;;  %870 = vmatpush3.bf16.msra.mxu1 %v862_v5  ;;  %s1066_s13 = smov (!%p172_p4, %s914_s13), 1 }
   0xe   : > { %s727_s23 = sshll.u32 %s1064_s20, 3  ;;  %808 = vmatprep.subr.msk.mxu0 %vm312_vm1, %v214_v6  ;;  %868 = vmatprep.subr.msk.mxu1 %vm312_vm1, %v214_v6  ;;  %s174_s4 = scalar_lea.vmem %s1061_s2, %s1066_s13 }
   0xf   : > { %s937_s28 = scalar_lea.vmem %s1059_s0, %s727_s23  ;;  %s177_s7 = scalar_lea.vmem %s1062_s3, %s1066_s13 }
  0x10   : > { %v178_v7 = vld [vmem:[%s937_s28] sm:$0xff]  ;;  %v179_v8 = vld [vmem:[%s937_s28 + $0x8] sm:$0xff]  ;;  %v180_v9 = vld [vmem:[%s937_s28 + $0x10] sm:$0xff] }
  0x11   : > { %810 = vmatprep.mubr.msk.f32.mxu0 %vm215_vm0, %v178_v7  ;;  %809 = vmatpush3.msk.msra.mxu0 %vm312_vm1, %v214_v6  ;;  %v194_v10 = vld [vmem:[%s937_s28 + $0x80] sm:$0xff]  ;;  %v195_v11 = vld [vmem:[%s937_s28 + $0x88] sm:$0xff]  ;;  %v196_v12 = vld [vmem:[%s937_s28 + $0x90] sm:$0xff] }
  0x12   : > { %811 = vmatmul.mubr.msk.f32.vlgmr.msra.gmra.mrb[0].mxu0 %vm215_vm0, %v179_v8  ;;  %871 = vmatpush3.msk.msra.mxu1 %vm312_vm1, %v214_v6  ;;  %v181_v13 = vld [vmem:[%s937_s28 + $0x18] sm:$0xff]  ;;  %v182_v14 = vld [vmem:[%s937_s28 + $0x20] sm:$0xff]  ;;  %v183_v17 = vld [vmem:[%s937_s28 + $0x28] sm:$0xff] }
  0x13   : > { %813 = vmatprep.mubr.msk.f32.mxu0 %vm215_vm0, %v180_v9  ;;  %834 = vmatprep.mubr.msk.f32.mxu1 %vm215_vm0, %v194_v10  ;;  %v197_v15 = vld [vmem:[%s937_s28 + $0x98] sm:$0xff]  ;;  %v198_v16 = vld [vmem:[%s937_s28 + $0xa0] sm:$0xff]  ;;  %v184_v18 = vld [vmem:[%s937_s28 + $0x30] sm:$0xff] }
  0x14   : > { %835 = vmatmul.mubr.msk.f32.vlgmr.msra.gmra.mrb[0].mxu1 %vm215_vm0, %v195_v11  ;;  %v199_v19 = vld [vmem:[%s937_s28 + $0xa8] sm:$0xff]  ;;  %v200_v20 = vld [vmem:[%s937_s28 + $0xb0] sm:$0xff]  ;;  %v185_v21 = vld [vmem:[%s937_s28 + $0x38] sm:$0xff] }
  0x15   : > { %837 = vmatprep.mubr.msk.f32.mxu1 %vm215_vm0, %v196_v12  ;;  %v186_v22 = vld [vmem:[%s937_s28 + $0x40] sm:$0xff]  ;;  %v201_v23 = vld [vmem:[%s937_s28 + $0xb8] sm:$0xff]  ;;  %v187_v25 = vld [vmem:[%s937_s28 + $0x48] sm:$0xff] }
  0x16   : > { %814 = vmatmul.mubr.msk.f32.gmra.mrb[2].mxu0 %vm215_vm0, %v181_v13  ;;  %v202_v24 = vld [vmem:[%s937_s28 + $0xc0] sm:$0xff]  ;;  %v188_v26 = vld [vmem:[%s937_s28 + $0x50] sm:$0xff]  ;;  %v203_v27 = vld [vmem:[%s937_s28 + $0xc8] sm:$0xff] }
  0x17   : > { %816 = vmatprep.mubr.msk.f32.mxu0 %vm215_vm0, %v182_v14  ;;  %v204_v28 = vld [vmem:[%s937_s28 + $0xd0] sm:$0xff]  ;;  %v189_v29 = vld [vmem:[%s937_s28 + $0x58] sm:$0xff]  ;;  %v190_v30 = vld [vmem:[%s937_s28 + $0x60] sm:$0xff] }
  0x18   : > { %838 = vmatmul.mubr.msk.f32.gmra.mrb[2].mxu1 %vm215_vm0, %v197_v15  ;;  %v205_v31 = vld [vmem:[%s937_s28 + $0xd8] sm:$0xff]  ;;  %v206_v32 = vld [vmem:[%s937_s28 + $0xe0] sm:$0xff]  ;;  %v191_v33 = vld [vmem:[%s937_s28 + $0x68] sm:$0xff] }
  0x19   : > { %840 = vmatprep.mubr.msk.f32.mxu1 %vm215_vm0, %v198_v16  ;;  %v192_v34 = vld [vmem:[%s937_s28 + $0x70] sm:$0xff]  ;;  %v207_v35 = vld [vmem:[%s937_s28 + $0xe8] sm:$0xff]  ;;  %v193_v37 = vld [vmem:[%s937_s28 + $0x78] sm:$0xff] }
  0x1a   : > { %817 = vmatmul.mubr.msk.f32.gmra.mrb[4].mxu0 %vm215_vm0, %v183_v17  ;;  %v208_v36 = vld [vmem:[%s937_s28 + $0xf0] sm:$0xff]  ;;  %v209_v38 = vld [vmem:[%s937_s28 + $0xf8] sm:$0xff] }
  0x1b   : > { %819 = vmatprep.mubr.msk.f32.mxu0 %vm215_vm0, %v184_v18 }
  0x1c   : > { %841 = vmatmul.mubr.msk.f32.gmra.mrb[4].mxu1 %vm215_vm0, %v199_v19 }
  0x1d   : > { %843 = vmatprep.mubr.msk.f32.mxu1 %vm215_vm0, %v200_v20 }
  0x1e   : > { %820 = vmatmul.mubr.msk.f32.gmra.mrb[6].mxu0 %vm215_vm0, %v185_v21 }
  0x1f   : > { %822 = vmatprep.mubr.msk.f32.mxu0 %vm215_vm0, %v186_v22 }
  0x20   : > { %844 = vmatmul.mubr.msk.f32.gmra.mrb[6].mxu1 %vm215_vm0, %v201_v23 }
  0x21   : > { %846 = vmatprep.mubr.msk.f32.mxu1 %vm215_vm0, %v202_v24 }
  0x22   : > { %823 = vmatmul.mubr.msk.f32.gmra.mrb[8].mxu0 %vm215_vm0, %v187_v25 }
  0x23   : > { %825 = vmatprep.mubr.msk.f32.mxu0 %vm215_vm0, %v188_v26 }
  0x24   : > { %847 = vmatmul.mubr.msk.f32.gmra.mrb[8].mxu1 %vm215_vm0, %v203_v27 }
  0x25   : > { %849 = vmatprep.mubr.msk.f32.mxu1 %vm215_vm0, %v204_v28 }
  0x26   : > { %826 = vmatmul.mubr.msk.f32.gmra.mrb[10].mxu0 %vm215_vm0, %v189_v29 }
  0x27   : > { %828 = vmatprep.mubr.msk.f32.mxu0 %vm215_vm0, %v190_v30 }
  0x28   : > { %850 = vmatmul.mubr.msk.f32.gmra.mrb[10].mxu1 %vm215_vm0, %v205_v31 }
  0x29   : > { %852 = vmatprep.mubr.msk.f32.mxu1 %vm215_vm0, %v206_v32 }
  0x2a   : > { %829 = vmatmul.mubr.msk.f32.gmra.mrb[12].mxu0 %vm215_vm0, %v191_v33 }
  0x2b   : > { %831 = vmatprep.mubr.msk.f32.mxu0 %vm215_vm0, %v192_v34 }
  0x2c   : > { %853 = vmatmul.mubr.msk.f32.gmra.mrb[12].mxu1 %vm215_vm0, %v207_v35 }
  0x2d   : > { %855 = vmatprep.mubr.msk.f32.mxu1 %vm215_vm0, %v208_v36 }
  0x2e   : > { %832 = vmatmul.mubr.msk.f32.gmra.mrb[14].mxu0 %vm215_vm0, %v193_v37 }
  0x30   : > { %856 = vmatmul.mubr.msk.f32.gmra.mrb[14].mxu1 %vm215_vm0, %v209_v38 }
  0xe5   : > { %v812_v39 = vpop.f32.mrb[0].mxu0 }
  0xe6   : > { %v580_v40 = vmul.f32 %v812_v39, %v812_v39  ;;  %v382_v41 = vpop.f32.mrb[1].mxu0 }
  0xe7   : > { %v541_v42 = vadd.f32 %v812_v39, %v382_v41  ;;  %v579_v43 = vmul.f32 %v382_v41, %v382_v41  ;;  %v1003_v44 = vpop.f32.mrb[0].mxu1 }
  0xe8   : > { %v1005_v45 = vpop.f32.mrb[1].mxu1 }
  0xe9   : > { %v611_v46 = vadd.f32 %v580_v40, %v579_v43  ;;  %v815_v47 = vpop.f32.mrb[2].mxu0 }
  0xea   : > { %v392_v48 = vpop.f32.mrb[3].mxu0  ;;  %v582_v53 = vmul.f32 %v815_v47, %v815_v47 }
  0xeb   : > { %v542_v49 = vadd.f32 %v541_v42, %v392_v48  ;;  %v581_v50 = vmul.f32 %v392_v48, %v392_v48  ;;  %v1007_v51 = vpop.f32.mrb[2].mxu1 }
  0xec   : > { %v1009_v52 = vpop.f32.mrb[3].mxu1 }
  0xed   : > { %v612_v54 = vadd.f32 %v611_v46, %v581_v50  ;;  %v818_v55 = vpop.f32.mrb[4].mxu0  ;;  %v543_v56 = vadd.f32 %v815_v47, %v542_v49 }
  0xee   : > { %v402_v57 = vpop.f32.mrb[5].mxu0  ;;  %v584_v63 = vmul.f32 %v818_v55, %v818_v55 }
  0xef   : > { %v544_v58 = vadd.f32 %v543_v56, %v402_v57  ;;  %v583_v59 = vmul.f32 %v402_v57, %v402_v57  ;;  %v613_v60 = vadd.f32 %v612_v54, %v582_v53  ;;  %v1011_v61 = vpop.f32.mrb[4].mxu1  ;;  %v595_v56 = vmul.f32 %v1005_v45, %v1005_v45 }
  0xf0   : > { %v1013_v62 = vpop.f32.mrb[5].mxu1 }
  0xf1   : > { %v614_v0 = vadd.f32 %v613_v60, %v583_v59  ;;  %v821_v1 = vpop.f32.mrb[6].mxu0  ;;  %v545_v2 = vadd.f32 %v818_v55, %v544_v58  ;;  %v596_v59 = vmul.f32 %v1003_v44, %v1003_v44 }
  0xf2   : > { %v412_v3 = vpop.f32.mrb[7].mxu0  ;;  %v586_v9 = vmul.f32 %v821_v1, %v821_v1 }
  0xf3   : > { %v546_v4 = vadd.f32 %v545_v2, %v412_v3  ;;  %v585_v5 = vmul.f32 %v412_v3, %v412_v3  ;;  %v615_v6 = vadd.f32 %v614_v0, %v584_v63  ;;  %v1015_v7 = vpop.f32.mrb[6].mxu1  ;;  %v597_v0 = vmul.f32 %v1009_v52, %v1009_v52 }
  0xf4   : > { %v1017_v8 = vpop.f32.mrb[7].mxu1  ;;  %v598_v3 = vmul.f32 %v1007_v51, %v1007_v51 }
  0xf5   : > { %v616_v10 = vadd.f32 %v615_v6, %v585_v5  ;;  %v824_v11 = vpop.f32.mrb[8].mxu0  ;;  %v547_v12 = vadd.f32 %v821_v1, %v546_v4 }
  0xf6   : > { %v422_v13 = vpop.f32.mrb[9].mxu0  ;;  %v588_v19 = vmul.f32 %v824_v11, %v824_v11 }
  0xf7   : > { %v548_v14 = vadd.f32 %v547_v12, %v422_v13  ;;  %v587_v15 = vmul.f32 %v422_v13, %v422_v13  ;;  %v617_v16 = vadd.f32 %v616_v10, %v586_v9  ;;  %v1019_v17 = vpop.f32.mrb[8].mxu1 }
  0xf8   : > { %v502_v18 = vpop.f32.mrb[9].mxu1 }
  0xf9   : > { %v618_v20 = vadd.f32 %v617_v16, %v587_v15  ;;  %v827_v21 = vpop.f32.mrb[10].mxu0  ;;  %v549_v22 = vadd.f32 %v824_v11, %v548_v14 }
  0xfa   : > { %v432_v23 = vpop.f32.mrb[11].mxu0  ;;  %v590_v29 = vmul.f32 %v827_v21, %v827_v21 }
  0xfb   : > { %v550_v24 = vadd.f32 %v549_v22, %v432_v23  ;;  %v589_v25 = vmul.f32 %v432_v23, %v432_v23  ;;  %v619_v26 = vadd.f32 %v618_v20, %v588_v19  ;;  %v851_v27 = vpop.f32.mrb[10].mxu1  ;;  %v604_v20 = vmul.f32 %v1019_v17, %v1019_v17 }
  0xfc   : > { %v512_v28 = vpop.f32.mrb[11].mxu1 }
  0xfd   : > { %v620_v30 = vadd.f32 %v619_v26, %v589_v25  ;;  %v830_v31 = vpop.f32.mrb[12].mxu0  ;;  %v551_v32 = vadd.f32 %v827_v21, %v550_v24  ;;  %v605_v22 = vmul.f32 %v512_v28, %v512_v28 }
  0xfe   : > { %v442_v33 = vpop.f32.mrb[13].mxu0  ;;  %v592_v39 = vmul.f32 %v830_v31, %v830_v31 }
  0xff   : > { %v552_v34 = vadd.f32 %v551_v32, %v442_v33  ;;  %v591_v35 = vmul.f32 %v442_v33, %v442_v33  ;;  %v621_v36 = vadd.f32 %v620_v30, %v590_v29  ;;  %v854_v37 = vpop.f32.mrb[12].mxu1 }
 0x100   : > { %v522_v38 = vpop.f32.mrb[13].mxu1 }
 0x101   : > { %v622_v40 = vadd.f32 %v621_v36, %v591_v35  ;;  %v833_v41 = vpop.f32.mrb[14].mxu0  ;;  %v553_v42 = vadd.f32 %v830_v31, %v552_v34  ;;  %v607_v29 = vmul.f32 %v522_v38, %v522_v38 }
 0x102   : > { %v452_v43 = vpop.f32.mrb[15].mxu0  ;;  %v594_v53 = vmul.f32 %v833_v41, %v833_v41 }
 0x103   : > { %v554_v46 = vadd.f32 %v553_v42, %v452_v43  ;;  %v593_v47 = vmul.f32 %v452_v43, %v452_v43  ;;  %v623_v48 = vadd.f32 %v622_v40, %v592_v39  ;;  %v857_v49 = vpop.f32.mrb[14].mxu1 }
 0x104   : > { %v532_v50 = vpop.f32.mrb[15].mxu1  ;;  %v610_v36 = vmul.f32 %v857_v49, %v857_v49 }
 0x105   : > { %v555_v54 = vadd.f32 %v833_v41, %v554_v46  ;;  %v624_v55 = vadd.f32 %v623_v48, %v593_v47  ;;  %v609_v33 = vmul.f32 %v532_v50, %v532_v50 }
 0x107   : > { %v625_v57 = vadd.f32 %v624_v55, %v594_v53  ;;  %v556_v58 = vadd.f32 %v555_v54, %v1005_v45  ;;  %v599_v45 = vmul.f32 %v1013_v62, %v1013_v62 }
 0x109   : > { %v626_v60 = vadd.f32 %v625_v57, %v595_v56  ;;  %v557_v63 = vadd.f32 %v1003_v44, %v556_v58  ;;  %v600_v44 = vmul.f32 %v1011_v61, %v1011_v61 }
 0x10b   : > { %v558_v1 = vadd.f32 %v557_v63, %v1009_v52  ;;  %v627_v2 = vadd.f32 %v626_v60, %v596_v59  ;;  %v601_v52 = vmul.f32 %v1017_v8, %v1017_v8 }
 0x10d   : > { %v628_v4 = vadd.f32 %v627_v2, %v597_v0  ;;  %v559_v5 = vadd.f32 %v1007_v51, %v558_v1  ;;  %v602_v51 = vmul.f32 %v1015_v7, %v1015_v7 }
 0x10f   : > { %v560_v6 = vadd.f32 %v559_v5, %v1013_v62  ;;  %v629_v9 = vadd.f32 %v628_v4, %v598_v3  ;;  %v603_v62 = vmul.f32 %v502_v18, %v502_v18 }
 0x111   : > { %v630_v10 = vadd.f32 %v629_v9, %v599_v45  ;;  %v561_v11 = vadd.f32 %v1011_v61, %v560_v6 }
 0x113   : > { %v562_v12 = vadd.f32 %v561_v11, %v1017_v8  ;;  %v631_v13 = vadd.f32 %v630_v10, %v600_v44  ;;  %v606_v8 = vmul.f32 %v851_v27, %v851_v27 }
 0x115   : > { %v632_v14 = vadd.f32 %v631_v13, %v601_v52  ;;  %v563_v15 = vadd.f32 %v1015_v7, %v562_v12  ;;  %v608_v7 = vmul.f32 %v854_v37, %v854_v37 }
 0x117   : > { %v564_v16 = vadd.f32 %v563_v15, %v502_v18  ;;  %v633_v19 = vadd.f32 %v632_v14, %v602_v51 }
 0x119   : > { %v634_v21 = vadd.f32 %v633_v19, %v603_v62  ;;  %v565_v61 = vadd.f32 %v1019_v17, %v564_v16 }
 0x11b   : > { %v566_v23 = vadd.f32 %v565_v61, %v512_v28  ;;  %v635_v24 = vadd.f32 %v634_v21, %v604_v20 }
 0x11d   : > { %v636_v25 = vadd.f32 %v635_v24, %v605_v22  ;;  %v567_v26 = vadd.f32 %v851_v27, %v566_v23 }
 0x11f   : > { %v568_v30 = vadd.f32 %v567_v26, %v522_v38  ;;  %v637_v31 = vadd.f32 %v636_v25, %v606_v8 }
 0x121   : > { %v638_v18 = vadd.f32 %v637_v31, %v607_v29  ;;  %v569_v32 = vadd.f32 %v854_v37, %v568_v30 }
 0x123   : > { %v570_v34 = vadd.f32 %v569_v32, %v532_v50  ;;  %v639_v35 = vadd.f32 %v638_v18, %v608_v7 }
 0x125   : > { %v571_v39 = vadd.f32 %v857_v49, %v570_v34  ;;  %v640_v17 = vadd.f32 %v639_v35, %v609_v33 }
 0x127   : > { %v572_v40 = vrot.slane %v571_v39, 4  ;;  %v641_v28 = vadd.f32 %v640_v17, %v610_v36 }
 0x129   : > { %v573_v41 = vadd.f32 %v572_v40, %v571_v39  ;;  %v642_v42 = vrot.slane %v641_v28, 4 }
 0x12b   : > { %v574_v43 = vrot.slane %v573_v41, 2  ;;  %v643_v27 = vadd.f32 %v642_v42, %v641_v28 }
 0x12d   : > { %v575_v38 = vadd.f32 %v574_v43, %v573_v41  ;;  %v644_v46 = vrot.slane %v643_v27, 2 }
 0x12f   : > { %v576_v47 = vrot.slane %v575_v38, 1  ;;  %v645_v48 = vadd.f32 %v644_v46, %v643_v27 }
 0x131   : > { %v577_v37 = vadd.f32 %v576_v47, %v575_v38  ;;  %v646_v50 = vrot.slane %v645_v48, 1 }
 0x133   : > { %578 = vst [vmem:[%s174_s4] sm:$0x1] %v577_v37  ;;  %v647_v49 = vadd.f32 %v646_v50, %v645_v48 }
 0x135   : > { %648 = vst [vmem:[%s177_s7] sm:$0x1] %v647_v49 }
 0x136 PF: > { %s14_s12 = sadd.s32 1, %s886_s12  }
 0x137   : > { %p11_p5 = scmp.ge.s32.totalorder %s14_s12, 4  }
 0x139   :  { %13 = sbr.rel (!%p11_p5) target bundleno = 1 (0x1), region = 70 }

// kernel: cnnblock_forward.3
= control target key start
LH: loop header
LB: loop body
LE: loop exit
PB: predicated region body
PF: predicated region fallthrough
CT: control target
= control target key end

     0   :  { %s1022_s15 = smov 0   ;;  %s1239_s0 = inlined_call_operand.vmem [shape: f32[512,36], index: 0, kind: input, shape index: {}]   ;;  %s1240_s1 = inlined_call_operand.vmem [shape: f32[36,128], index: 1, kind: input, shape index: {}]   ;;  %s1241_s2 = inlined_call_operand.vmem [shape: f32[1,128], index: 2, kind: input, shape index: {}]   ;;  %s1242_s3 = inlined_call_operand.vmem [shape: f32[1,128], index: 3, kind: input, shape index: {}]   ;;  %s1243_s4 = inlined_call_operand.vmem [shape: f32[512,128], index: 4, kind: output, shape index: {}]  }
   0x1 LB: > { %s826_s16 = sadd.s32 4294967295, %s995_s15   ;;  %p830_p0 = scmp.ge.s32.totalorder %s995_s15, 1  ;;  %s995_s15 = sphi %s1022_s15, %s14_s15  }
   0x2   : > { %p163_p1 = scmp.lt.s32.totalorder %s995_s15, 3 }
   0x4   : > { %p164_p2 = pnand %p830_p0, %p163_p1 }
   0x5   : > { %v233_v0 = vld [vmem:[%s1240_s1] sm:$0xff] (!%p164_p2)  ;;  %v234_v1 = vld [vmem:[%s1240_s1 + $0x8] sm:$0xff] (!%p164_p2)  ;;  %v235_v2 = vld [vmem:[%s1240_s1 + $0x10] sm:$0xff] (!%p164_p2)  ;;  %s831_s23 = sshll.u32 (!%p164_p2), %s826_s16, 5  ;;  %vm335_vm0 = vcmask (!%p164_p2), 1043456   ;;  %vm238_vm1 = vcmask (!%p164_p2), 293888  }
   0x6   : > { %167 = sbr.rel (%p164_p2) target bundleno = 277 (0x115), region = 36  ;;  %v967_v3 = vpack.c.bf16 (!%p164_p2), %v234_v1, %v233_v0  ;;  %v236_v4 = vld [vmem:[%s1240_s1 + $0x18] sm:$0xff] (!%p164_p2)  ;;  %p190_p3 = scmp.lt.s32.totalorder (!%p164_p2), %s831_s23, 63  ;;  %v237_v6 = vld [vmem:[%s1240_s1 + $0x20] sm:$0xf] (!%p164_p2) }
   0x7   : > { %v971_v5 = vpack.c.bf16 (!%p164_p2), %v236_v4, %v235_v2  ;;  %v1126_v39 = vld [vmem:[%s1241_s2] ss:$0 sm:$0xff] (!%p164_p2) }
   0x8   : > { %968 = vmatprep.subr.bf16.mxu0 (!%p164_p2), %v967_v3  ;;  %975 = vmatprep.subr.bf16.mxu1 (!%p164_p2), %v967_v3  ;;  %v1131_v41 = vld [vmem:[%s1242_s3] ss:$0 sm:$0xff] (!%p164_p2) }
   0x9   : > { %970 = vmatpush3.bf16.msra.mxu0 (!%p164_p2), %v967_v3  ;;  %978 = vmatpush3.bf16.msra.mxu1 (!%p164_p2), %v967_v3 }
   0xa   : > { %972 = vmatprep.subr.bf16.mxu0 (!%p164_p2), %v971_v5  ;;  %976 = vmatprep.subr.bf16.mxu1 (!%p164_p2), %v971_v5 }
   0xd   : > { %s1245_s23 = smov (!%p190_p3, %s831_s23), 63  ;;  %974 = vmatpush3.bf16.msra.mxu0 %v971_v5  ;;  %979 = vmatpush3.bf16.msra.mxu1 %v971_v5 }
   0xe   : > { %s832_s26 = sshll.u32 %s1245_s23, 3  ;;  %917 = vmatprep.subr.msk.mxu0 %vm335_vm0, %v237_v6  ;;  %977 = vmatprep.subr.msk.mxu1 %vm335_vm0, %v237_v6 }
   0xf   : > { %s1053_s5 = scalar_lea.vmem %s1239_s0, %s832_s26  ;;  %s1146_s12 = scalar_lea.vmem %s1243_s4, %s832_s26 }
  0x10   : > { %v201_v7 = vld [vmem:[%s1053_s5] sm:$0xff]  ;;  %v202_v9 = vld [vmem:[%s1053_s5 + $0x8] sm:$0xff]  ;;  %v203_v11 = vld [vmem:[%s1053_s5 + $0x10] sm:$0xff] }
  0x11   : > { %v217_v8 = vld [vmem:[%s1053_s5 + $0x80] sm:$0xff]  ;;  %919 = vmatprep.mubr.msk.f32.mxu0 %vm238_vm1, %v201_v7  ;;  %v218_v10 = vld [vmem:[%s1053_s5 + $0x88] sm:$0xff]  ;;  %v219_v12 = vld [vmem:[%s1053_s5 + $0x90] sm:$0xff]  ;;  %918 = vmatpush3.msk.msra.mxu0 %vm335_vm0, %v237_v6 }
  0x12   : > { %943 = vmatprep.mubr.msk.f32.mxu1 %vm238_vm1, %v217_v8  ;;  %980 = vmatpush3.msk.msra.mxu1 %vm335_vm0, %v237_v6  ;;  %v204_v13 = vld [vmem:[%s1053_s5 + $0x18] sm:$0xff]  ;;  %v205_v15 = vld [vmem:[%s1053_s5 + $0x20] sm:$0xff]  ;;  %v206_v17 = vld [vmem:[%s1053_s5 + $0x28] sm:$0xff] }
  0x13   : > { %920 = vmatmul.mubr.msk.f32.vlgmr.msra.gmra.mrb[0].mxu0 %vm238_vm1, %v202_v9  ;;  %944 = vmatmul.mubr.msk.f32.vlgmr.msra.gmra.mrb[0].mxu1 %vm238_vm1, %v218_v10  ;;  %v220_v14 = vld [vmem:[%s1053_s5 + $0x98] sm:$0xff]  ;;  %v221_v16 = vld [vmem:[%s1053_s5 + $0xa0] sm:$0xff]  ;;  %v222_v18 = vld [vmem:[%s1053_s5 + $0xa8] sm:$0xff] }
  0x14   : > { %922 = vmatprep.mubr.msk.f32.mxu0 %vm238_vm1, %v203_v11  ;;  %946 = vmatprep.mubr.msk.f32.mxu1 %vm238_vm1, %v219_v12  ;;  %v207_v19 = vld [vmem:[%s1053_s5 + $0x30] sm:$0xff]  ;;  %v208_v21 = vld [vmem:[%s1053_s5 + $0x38] sm:$0xff]  ;;  %v209_v23 = vld [vmem:[%s1053_s5 + $0x40] sm:$0xff] }
  0x15   : > { %v223_v20 = vld [vmem:[%s1053_s5 + $0xb0] sm:$0xff]  ;;  %v224_v22 = vld [vmem:[%s1053_s5 + $0xb8] sm:$0xff]  ;;  %v225_v24 = vld [vmem:[%s1053_s5 + $0xc0] sm:$0xff] }
  0x16   : > { %v210_v25 = vld [vmem:[%s1053_s5 + $0x48] sm:$0xff]  ;;  %v211_v27 = vld [vmem:[%s1053_s5 + $0x50] sm:$0xff]  ;;  %v212_v29 = vld [vmem:[%s1053_s5 + $0x58] sm:$0xff] }
  0x17   : > { %923 = vmatmul.mubr.msk.f32.gmra.mrb[2].mxu0 %vm238_vm1, %v204_v13  ;;  %947 = vmatmul.mubr.msk.f32.gmra.mrb[2].mxu1 %vm238_vm1, %v220_v14  ;;  %v226_v26 = vld [vmem:[%s1053_s5 + $0xc8] sm:$0xff]  ;;  %v227_v28 = vld [vmem:[%s1053_s5 + $0xd0] sm:$0xff]  ;;  %v228_v30 = vld [vmem:[%s1053_s5 + $0xd8] sm:$0xff] }
  0x18   : > { %925 = vmatprep.mubr.msk.f32.mxu0 %vm238_vm1, %v205_v15  ;;  %949 = vmatprep.mubr.msk.f32.mxu1 %vm238_vm1, %v221_v16  ;;  %v213_v31 = vld [vmem:[%s1053_s5 + $0x60] sm:$0xff]  ;;  %v214_v33 = vld [vmem:[%s1053_s5 + $0x68] sm:$0xff]  ;;  %v215_v35 = vld [vmem:[%s1053_s5 + $0x70] sm:$0xff] }
  0x19   : > { %v229_v32 = vld [vmem:[%s1053_s5 + $0xe0] sm:$0xff]  ;;  %v230_v34 = vld [vmem:[%s1053_s5 + $0xe8] sm:$0xff]  ;;  %v231_v36 = vld [vmem:[%s1053_s5 + $0xf0] sm:$0xff] }
  0x1a   : > { %v216_v37 = vld [vmem:[%s1053_s5 + $0x78] sm:$0xff] }
  0x1b   : > { %926 = vmatmul.mubr.msk.f32.gmra.mrb[4].mxu0 %vm238_vm1, %v206_v17  ;;  %950 = vmatmul.mubr.msk.f32.gmra.mrb[4].mxu1 %vm238_vm1, %v222_v18  ;;  %v232_v38 = vld [vmem:[%s1053_s5 + $0xf8] sm:$0xff] }
  0x1c   : > { %928 = vmatprep.mubr.msk.f32.mxu0 %vm238_vm1, %v207_v19  ;;  %952 = vmatprep.mubr.msk.f32.mxu1 %vm238_vm1, %v223_v20 }
  0x1f   : > { %929 = vmatmul.mubr.msk.f32.gmra.mrb[6].mxu0 %vm238_vm1, %v208_v21  ;;  %953 = vmatmul.mubr.msk.f32.gmra.mrb[6].mxu1 %vm238_vm1, %v224_v22 }
  0x20   : > { %931 = vmatprep.mubr.msk.f32.mxu0 %vm238_vm1, %v209_v23  ;;  %955 = vmatprep.mubr.msk.f32.mxu1 %vm238_vm1, %v225_v24 }
  0x23   : > { %932 = vmatmul.mubr.msk.f32.gmra.mrb[8].mxu0 %vm238_vm1, %v210_v25  ;;  %956 = vmatmul.mubr.msk.f32.gmra.mrb[8].mxu1 %vm238_vm1, %v226_v26 }
  0x24   : > { %934 = vmatprep.mubr.msk.f32.mxu0 %vm238_vm1, %v211_v27  ;;  %958 = vmatprep.mubr.msk.f32.mxu1 %vm238_vm1, %v227_v28 }
  0x27   : > { %935 = vmatmul.mubr.msk.f32.gmra.mrb[10].mxu0 %vm238_vm1, %v212_v29  ;;  %959 = vmatmul.mubr.msk.f32.gmra.mrb[10].mxu1 %vm238_vm1, %v228_v30 }
  0x28   : > { %937 = vmatprep.mubr.msk.f32.mxu0 %vm238_vm1, %v213_v31  ;;  %961 = vmatprep.mubr.msk.f32.mxu1 %vm238_vm1, %v229_v32 }
  0x2b   : > { %938 = vmatmul.mubr.msk.f32.gmra.mrb[12].mxu0 %vm238_vm1, %v214_v33  ;;  %962 = vmatmul.mubr.msk.f32.gmra.mrb[12].mxu1 %vm238_vm1, %v230_v34 }
  0x2c   : > { %940 = vmatprep.mubr.msk.f32.mxu0 %vm238_vm1, %v215_v35  ;;  %964 = vmatprep.mubr.msk.f32.mxu1 %vm238_vm1, %v231_v36 }
  0x2f   : > { %941 = vmatmul.mubr.msk.f32.gmra.mrb[14].mxu0 %vm238_vm1, %v216_v37  ;;  %965 = vmatmul.mubr.msk.f32.gmra.mrb[14].mxu1 %vm238_vm1, %v232_v38 }
  0xe6   : > { %v921_v40 = vpop.f32.mrb[0].mxu0  ;;  %v945_v42 = vpop.f32.mrb[0].mxu1 }
  0xe7   : > { %v572_v43 = vmul.f32 %v921_v40, %v1126_v39  ;;  %v588_v44 = vmul.f32 %v945_v42, %v1126_v39  ;;  %v405_v45 = vpop.f32.mrb[1].mxu0  ;;  %v485_v46 = vpop.f32.mrb[1].mxu1 }
  0xe8   : > { %v571_v47 = vmul.f32 %v1126_v39, %v405_v45  ;;  %v587_v48 = vmul.f32 %v1126_v39, %v485_v46 }
  0xe9   : > { %v611_v49 = vadd.f32 %v1131_v41, %v572_v43  ;;  %v627_v50 = vadd.f32 %v1131_v41, %v588_v44 }
  0xea   : > { %v610_v51 = vadd.f32 %v1131_v41, %v571_v47  ;;  %v626_v52 = vadd.f32 %v1131_v41, %v587_v48  ;;  %v924_v53 = vpop.f32.mrb[2].mxu0  ;;  %v948_v54 = vpop.f32.mrb[2].mxu1 }
  0xeb   : > { %vm643_vm2 = vcmp.ge.f32.partialorder %v611_v49, 0.0  ;;  %v675_v55 = vmul.f32 0.2, %v611_v49  ;;  %vm659_vm3 = vcmp.ge.f32.partialorder %v627_v50, 0.0  ;;  %v691_v56 = vmul.f32 0.2, %v627_v50 }
  0xec   : > { %vm642_vm4 = vcmp.ge.f32.partialorder %v610_v51, 0.0  ;;  %v674_v57 = vmul.f32 0.2, %v610_v51  ;;  %vm658_vm5 = vcmp.ge.f32.partialorder %v626_v52, 0.0  ;;  %v690_v58 = vmul.f32 0.2, %v626_v52 }
  0xed   : > { %v707_v59 = vsel %vm643_vm2, %v611_v49, %v675_v55  ;;  %v723_v60 = vsel %vm659_vm3, %v627_v50, %v691_v56  ;;  %v574_v61 = vmul.f32 %v924_v53, %v1126_v39  ;;  %v590_v62 = vmul.f32 %v948_v54, %v1126_v39  ;;  %v415_v63 = vpop.f32.mrb[3].mxu0  ;;  %v495_v0 = vpop.f32.mrb[3].mxu1 }
  0xee   : > { %739 = vst [vmem:[%s1146_s12 + $0x8] sm:$0xff] %v707_v59  ;;  %755 = vst [vmem:[%s1146_s12 + $0x88] sm:$0xff] %v723_v60  ;;  %v706_v1 = vsel %vm642_vm4, %v610_v51, %v674_v57  ;;  %v722_v2 = vsel %vm658_vm5, %v626_v52, %v690_v58  ;;  %v573_v3 = vmul.f32 %v1126_v39, %v415_v63  ;;  %v927_v5 = vpop.f32.mrb[4].mxu0  ;;  %v951_v6 = vpop.f32.mrb[4].mxu1 }
  0xef   : > { %v589_v4 = vmul.f32 %v1126_v39, %v495_v0  ;;  %738 = vst [vmem:[%s1146_s12] sm:$0xff] %v706_v1  ;;  %754 = vst [vmem:[%s1146_s12 + $0x80] sm:$0xff] %v722_v2  ;;  %v613_v7 = vadd.f32 %v1131_v41, %v574_v61  ;;  %v629_v8 = vadd.f32 %v1131_v41, %v590_v62  ;;  %v425_v11 = vpop.f32.mrb[5].mxu0  ;;  %v505_v12 = vpop.f32.mrb[5].mxu1 }
  0xf0   : > { %v576_v9 = vmul.f32 %v927_v5, %v1126_v39  ;;  %v592_v10 = vmul.f32 %v951_v6, %v1126_v39  ;;  %v612_v13 = vadd.f32 %v1131_v41, %v573_v3  ;;  %v575_v15 = vmul.f32 %v1126_v39, %v425_v11 }
  0xf1   : > { %v628_v14 = vadd.f32 %v1131_v41, %v589_v4  ;;  %v591_v16 = vmul.f32 %v1126_v39, %v505_v12  ;;  %vm645_vm6 = vcmp.ge.f32.partialorder %v613_v7, 0.0  ;;  %v677_v17 = vmul.f32 0.2, %v613_v7 }
  0xf2   : > { %vm661_vm7 = vcmp.ge.f32.partialorder %v629_v8, 0.0  ;;  %v693_v18 = vmul.f32 0.2, %v629_v8  ;;  %vm644_vm8 = vcmp.ge.f32.partialorder %v612_v13, 0.0  ;;  %v676_v19 = vmul.f32 0.2, %v612_v13 }
  0xf3   : > { %vm660_vm9 = vcmp.ge.f32.partialorder %v628_v14, 0.0  ;;  %v692_v20 = vmul.f32 0.2, %v628_v14  ;;  %v709_v21 = vsel %vm645_vm6, %v613_v7, %v677_v17  ;;  %v615_v23 = vadd.f32 %v1131_v41, %v576_v9  ;;  %v930_v25 = vpop.f32.mrb[6].mxu0  ;;  %v954_v26 = vpop.f32.mrb[6].mxu1 }
  0xf4   : > { %v725_v22 = vsel %vm661_vm7, %v629_v8, %v693_v18  ;;  %v631_v24 = vadd.f32 %v1131_v41, %v592_v10  ;;  %741 = vst [vmem:[%s1146_s12 + $0x18] sm:$0xff] %v709_v21  ;;  %v708_v27 = vsel %vm644_vm8, %v612_v13, %v676_v19  ;;  %v614_v29 = vadd.f32 %v1131_v41, %v575_v15  ;;  %v435_v31 = vpop.f32.mrb[7].mxu0  ;;  %v515_v32 = vpop.f32.mrb[7].mxu1 }
  0xf5   : > { %757 = vst [vmem:[%s1146_s12 + $0x98] sm:$0xff] %v725_v22  ;;  %v724_v28 = vsel %vm660_vm9, %v628_v14, %v692_v20  ;;  %v630_v30 = vadd.f32 %v1131_v41, %v591_v16  ;;  %740 = vst [vmem:[%s1146_s12 + $0x10] sm:$0xff] %v708_v27  ;;  %vm647_vm10 = vcmp.ge.f32.partialorder %v615_v23, 0.0  ;;  %v679_v33 = vmul.f32 0.2, %v615_v23 }
  0xf6   : > { %756 = vst [vmem:[%s1146_s12 + $0x90] sm:$0xff] %v724_v28  ;;  %vm663_vm11 = vcmp.ge.f32.partialorder %v631_v24, 0.0  ;;  %v695_v34 = vmul.f32 0.2, %v631_v24  ;;  %vm646_vm12 = vcmp.ge.f32.partialorder %v614_v29, 0.0  ;;  %v578_v40 = vmul.f32 %v930_v25, %v1126_v39  ;;  %v933_v43 = vpop.f32.mrb[8].mxu0 }
  0xf7   : > { %v678_v35 = vmul.f32 0.2, %v614_v29  ;;  %vm662_vm13 = vcmp.ge.f32.partialorder %v630_v30, 0.0  ;;  %v694_v36 = vmul.f32 0.2, %v630_v30  ;;  %v711_v37 = vsel %vm647_vm10, %v615_v23, %v679_v33  ;;  %v957_v44 = vpop.f32.mrb[8].mxu1 }
  0xf8   : > { %v727_v38 = vsel %vm663_vm11, %v631_v24, %v695_v34  ;;  %v594_v42 = vmul.f32 %v954_v26, %v1126_v39  ;;  %743 = vst [vmem:[%s1146_s12 + $0x28] sm:$0xff] %v711_v37  ;;  %v577_v47 = vmul.f32 %v1126_v39, %v435_v31  ;;  %v593_v48 = vmul.f32 %v1126_v39, %v515_v32  ;;  %v445_v49 = vpop.f32.mrb[9].mxu0  ;;  %v525_v50 = vpop.f32.mrb[9].mxu1 }
  0xf9   : > { %759 = vst [vmem:[%s1146_s12 + $0xa8] sm:$0xff] %v727_v38  ;;  %v710_v45 = vsel %vm646_vm12, %v614_v29, %v678_v35  ;;  %v726_v46 = vsel %vm662_vm13, %v630_v30, %v694_v36  ;;  %v617_v51 = vadd.f32 %v1131_v41, %v578_v40  ;;  %v580_v53 = vmul.f32 %v933_v43, %v1126_v39 }
  0xfa   : > { %742 = vst [vmem:[%s1146_s12 + $0x20] sm:$0xff] %v710_v45  ;;  %758 = vst [vmem:[%s1146_s12 + $0xa0] sm:$0xff] %v726_v46  ;;  %v633_v52 = vadd.f32 %v1131_v41, %v594_v42  ;;  %v596_v54 = vmul.f32 %v957_v44, %v1126_v39  ;;  %v616_v55 = vadd.f32 %v1131_v41, %v577_v47  ;;  %v936_v59 = vpop.f32.mrb[10].mxu0  ;;  %v960_v60 = vpop.f32.mrb[10].mxu1 }
  0xfb   : > { %v632_v56 = vadd.f32 %v1131_v41, %v593_v48  ;;  %v579_v57 = vmul.f32 %v1126_v39, %v445_v49  ;;  %v595_v58 = vmul.f32 %v1126_v39, %v525_v50  ;;  %vm649_vm14 = vcmp.ge.f32.partialorder %v617_v51, 0.0  ;;  %v455_v5 = vpop.f32.mrb[11].mxu0  ;;  %v535_v6 = vpop.f32.mrb[11].mxu1 }
  0xfc   : > { %v681_v61 = vmul.f32 0.2, %v617_v51  ;;  %vm665_vm15 = vcmp.ge.f32.partialorder %v633_v52, 0.0  ;;  %v697_v62 = vmul.f32 0.2, %v633_v52  ;;  %vm648_vm0 = vcmp.ge.f32.partialorder %v616_v55, 0.0 }
  0xfd   : > { %v680_v63 = vmul.f32 0.2, %v616_v55  ;;  %vm664_vm1 = vcmp.ge.f32.partialorder %v632_v56, 0.0  ;;  %v696_v0 = vmul.f32 0.2, %v632_v56  ;;  %v619_v3 = vadd.f32 %v1131_v41, %v580_v53 }
  0xfe   : > { %v713_v1 = vsel %vm649_vm14, %v617_v51, %v681_v61  ;;  %v729_v2 = vsel %vm665_vm15, %v633_v52, %v697_v62  ;;  %v635_v4 = vadd.f32 %v1131_v41, %v596_v54  ;;  %v618_v9 = vadd.f32 %v1131_v41, %v579_v57  ;;  %v939_v11 = vpop.f32.mrb[12].mxu0  ;;  %v963_v12 = vpop.f32.mrb[12].mxu1 }
  0xff   : > { %745 = vst [vmem:[%s1146_s12 + $0x38] sm:$0xff] %v713_v1  ;;  %761 = vst [vmem:[%s1146_s12 + $0xb8] sm:$0xff] %v729_v2  ;;  %v712_v7 = vsel %vm648_vm0, %v616_v55, %v680_v63  ;;  %v728_v8 = vsel %vm664_vm1, %v632_v56, %v696_v0  ;;  %v634_v10 = vadd.f32 %v1131_v41, %v595_v58  ;;  %vm651_vm2 = vcmp.ge.f32.partialorder %v619_v3, 0.0  ;;  %v465_v21 = vpop.f32.mrb[13].mxu0  ;;  %v545_v22 = vpop.f32.mrb[13].mxu1 }
 0x100   : > { %744 = vst [vmem:[%s1146_s12 + $0x30] sm:$0xff] %v712_v7  ;;  %760 = vst [vmem:[%s1146_s12 + $0xb0] sm:$0xff] %v728_v8  ;;  %v683_v13 = vmul.f32 0.2, %v619_v3  ;;  %vm667_vm3 = vcmp.ge.f32.partialorder %v635_v4, 0.0  ;;  %vm650_vm4 = vcmp.ge.f32.partialorder %v618_v9, 0.0  ;;  %v582_v19 = vmul.f32 %v936_v59, %v1126_v39 }
 0x101   : > { %v699_v14 = vmul.f32 0.2, %v635_v4  ;;  %v682_v15 = vmul.f32 0.2, %v618_v9  ;;  %vm666_vm5 = vcmp.ge.f32.partialorder %v634_v10, 0.0  ;;  %v598_v20 = vmul.f32 %v960_v60, %v1126_v39 }
 0x102   : > { %v698_v16 = vmul.f32 0.2, %v634_v10  ;;  %v715_v17 = vsel %vm651_vm2, %v619_v3, %v683_v13  ;;  %v581_v25 = vmul.f32 %v1126_v39, %v455_v5  ;;  %v597_v26 = vmul.f32 %v1126_v39, %v535_v6  ;;  %v942_v27 = vpop.f32.mrb[14].mxu0  ;;  %v966_v28 = vpop.f32.mrb[14].mxu1 }
 0x103   : > { %v731_v18 = vsel %vm667_vm3, %v635_v4, %v699_v14  ;;  %747 = vst [vmem:[%s1146_s12 + $0x48] sm:$0xff] %v715_v17  ;;  %v714_v23 = vsel %vm650_vm4, %v618_v9, %v682_v15  ;;  %v621_v29 = vadd.f32 %v1131_v41, %v582_v19  ;;  %v637_v30 = vadd.f32 %v1131_v41, %v598_v20  ;;  %v475_v33 = vpop.f32.mrb[15].mxu0  ;;  %v555_v34 = vpop.f32.mrb[15].mxu1 }
 0x104   : > { %763 = vst [vmem:[%s1146_s12 + $0xc8] sm:$0xff] %v731_v18  ;;  %v730_v24 = vsel %vm666_vm5, %v634_v10, %v698_v16  ;;  %746 = vst [vmem:[%s1146_s12 + $0x40] sm:$0xff] %v714_v23  ;;  %v584_v31 = vmul.f32 %v939_v11, %v1126_v39  ;;  %v600_v32 = vmul.f32 %v963_v12, %v1126_v39 }
 0x105   : > { %762 = vst [vmem:[%s1146_s12 + $0xc0] sm:$0xff] %v730_v24  ;;  %v620_v35 = vadd.f32 %v1131_v41, %v581_v25  ;;  %v636_v36 = vadd.f32 %v1131_v41, %v597_v26  ;;  %v583_v37 = vmul.f32 %v1126_v39, %v465_v21  ;;  %v599_v38 = vmul.f32 %v1126_v39, %v545_v22 }
 0x106   : > { %vm653_vm6 = vcmp.ge.f32.partialorder %v621_v29, 0.0  ;;  %v685_v40 = vmul.f32 0.2, %v621_v29  ;;  %vm669_vm7 = vcmp.ge.f32.partialorder %v637_v30, 0.0  ;;  %v701_v42 = vmul.f32 0.2, %v637_v30 }
 0x107   : > { %vm652_vm8 = vcmp.ge.f32.partialorder %v620_v35, 0.0  ;;  %v684_v43 = vmul.f32 0.2, %v620_v35  ;;  %vm668_vm9 = vcmp.ge.f32.partialorder %v636_v36, 0.0  ;;  %v700_v44 = vmul.f32 0.2, %v636_v36 }
 0x108   : > { %v717_v45 = vsel %vm653_vm6, %v621_v29, %v685_v40  ;;  %v733_v46 = vsel %vm669_vm7, %v637_v30, %v701_v42  ;;  %v623_v47 = vadd.f32 %v1131_v41, %v584_v31  ;;  %v639_v48 = vadd.f32 %v1131_v41, %v600_v32 }
 0x109   : > { %749 = vst [vmem:[%s1146_s12 + $0x58] sm:$0xff] %v717_v45  ;;  %765 = vst [vmem:[%s1146_s12 + $0xd8] sm:$0xff] %v733_v46  ;;  %v716_v49 = vsel %vm652_vm8, %v620_v35, %v684_v43  ;;  %v732_v50 = vsel %vm668_vm9, %v636_v36, %v700_v44  ;;  %v622_v51 = vadd.f32 %v1131_v41, %v583_v37 }
 0x10a   : > { %v638_v52 = vadd.f32 %v1131_v41, %v599_v38  ;;  %748 = vst [vmem:[%s1146_s12 + $0x50] sm:$0xff] %v716_v49  ;;  %764 = vst [vmem:[%s1146_s12 + $0xd0] sm:$0xff] %v732_v50  ;;  %vm655_vm10 = vcmp.ge.f32.partialorder %v623_v47, 0.0  ;;  %v687_v53 = vmul.f32 0.2, %v623_v47  ;;  %vm671_vm11 = vcmp.ge.f32.partialorder %v639_v48, 0.0 }
 0x10b   : > { %v703_v54 = vmul.f32 0.2, %v639_v48  ;;  %vm654_vm12 = vcmp.ge.f32.partialorder %v622_v51, 0.0  ;;  %v686_v55 = vmul.f32 0.2, %v622_v51  ;;  %v586_v59 = vmul.f32 %v942_v27, %v1126_v39 }
 0x10c   : > { %vm670_vm13 = vcmp.ge.f32.partialorder %v638_v52, 0.0  ;;  %v702_v56 = vmul.f32 0.2, %v638_v52  ;;  %v719_v57 = vsel %vm655_vm10, %v623_v47, %v687_v53  ;;  %v602_v60 = vmul.f32 %v966_v28, %v1126_v39 }
 0x10d   : > { %v735_v58 = vsel %vm671_vm11, %v639_v48, %v703_v54  ;;  %751 = vst [vmem:[%s1146_s12 + $0x68] sm:$0xff] %v719_v57  ;;  %v718_v61 = vsel %vm654_vm12, %v622_v51, %v686_v55  ;;  %v585_v63 = vmul.f32 %v1126_v39, %v475_v33  ;;  %v601_v0 = vmul.f32 %v1126_v39, %v555_v34 }
 0x10e   : > { %767 = vst [vmem:[%s1146_s12 + $0xe8] sm:$0xff] %v735_v58  ;;  %v734_v62 = vsel %vm670_vm13, %v638_v52, %v702_v56  ;;  %750 = vst [vmem:[%s1146_s12 + $0x60] sm:$0xff] %v718_v61  ;;  %v625_v1 = vadd.f32 %v1131_v41, %v586_v59  ;;  %v641_v2 = vadd.f32 %v1131_v41, %v602_v60 }
 0x10f   : > { %766 = vst [vmem:[%s1146_s12 + $0xe0] sm:$0xff] %v734_v62  ;;  %v624_v3 = vadd.f32 %v1131_v41, %v585_v63  ;;  %v640_v4 = vadd.f32 %v1131_v41, %v601_v0 }
 0x110   : > { %vm657_vm14 = vcmp.ge.f32.partialorder %v625_v1, 0.0  ;;  %v689_v5 = vmul.f32 0.2, %v625_v1  ;;  %vm673_vm15 = vcmp.ge.f32.partialorder %v641_v2, 0.0  ;;  %v705_v6 = vmul.f32 0.2, %v641_v2 }
 0x111   : > { %vm656_vm0 = vcmp.ge.f32.partialorder %v624_v3, 0.0  ;;  %v688_v39 = vmul.f32 0.2, %v624_v3  ;;  %vm672_vm1 = vcmp.ge.f32.partialorder %v640_v4, 0.0  ;;  %v704_v7 = vmul.f32 0.2, %v640_v4 }
 0x112   : > { %v721_v8 = vsel %vm657_vm14, %v625_v1, %v689_v5  ;;  %v737_v9 = vsel %vm673_vm15, %v641_v2, %v705_v6 }
 0x113   : > { %753 = vst [vmem:[%s1146_s12 + $0x78] sm:$0xff] %v721_v8  ;;  %769 = vst [vmem:[%s1146_s12 + $0xf8] sm:$0xff] %v737_v9  ;;  %v720_v10 = vsel %vm656_vm0, %v624_v3, %v688_v39  ;;  %v736_v11 = vsel %vm672_vm1, %v640_v4, %v704_v7 }
 0x114   : > { %752 = vst [vmem:[%s1146_s12 + $0x70] sm:$0xff] %v720_v10  ;;  %768 = vst [vmem:[%s1146_s12 + $0xf0] sm:$0xff] %v736_v11 }
 0x115 PF: > { %s14_s15 = sadd.s32 1, %s995_s15  }
 0x116   : > { %p11_p4 = scmp.ge.s32.totalorder %s14_s15, 4  }
 0x118   :  { %13 = sbr.rel (!%p11_p4) target bundleno = 1 (0x1), region = 66 }

</bundles_post_ra>
